<compile_context>
chip_gen: v6e
topology: v6e:2x2x1
jax: 0.10.0
libtpu: 0.0.40
codegen_flags: <defaults>
</compile_context>

<pallas_src>
import functools

import jax
import jax.numpy as jnp
import numpy as np
from jax.experimental import pallas as pl
from jax.experimental.pallas import tpu as pltpu

_LANES = 128
_MAX_BLOCK_ROWS = 1024  # 1024*128*4 B = 512 KiB per input per buffer (3 in x 2 buf = 3 MiB)


def _round_up(x, m):
    return -(-x // m) * m


# ----------------------------------------------------------------------------
# Kernel 1: masked sum-of-squared-errors reduction.
#   out[0] = sum((1-m) * (x - y)^2),  out[1] = sum(1-m)
# Grid iterates over large row-tiles of the flattened arrays.  Per step we only
# do element-wise VPU work into block-shaped VMEM accumulators; the single
# cross-lane/sublane reduce + SMEM store happens once at the last step.
# ----------------------------------------------------------------------------
def _masked_sse_kernel(x_ref, y_ref, m_ref, out_ref, acc_sse, acc_w,
                       *, total, block_rows, exact):
    i = pl.program_id(0)
    nb = pl.num_programs(0)

    @pl.when(i == 0)
    def _init():
        acc_sse[...] = jnp.zeros_like(acc_sse)
        acc_w[...] = jnp.zeros_like(acc_w)

    d = x_ref[...] - y_ref[...]
    w = 1.0 - m_ref[...]          # mask complement computed in-kernel (free VPU slot)
    contrib = w * d * d

    if not exact:
        # Ragged tail: mask out elements past the true length (covers both lane
        # padding and grid-block overhang, whose contents are unspecified).
        row = jax.lax.broadcasted_iota(jnp.int32, (block_rows, _LANES), 0)
        col = jax.lax.broadcasted_iota(jnp.int32, (block_rows, _LANES), 1)
        idx = (i * block_rows + row) * _LANES + col
        valid = idx < total
        contrib = jnp.where(valid, contrib, 0.0)
        w = jnp.where(valid, w, 0.0)

    acc_sse[...] += contrib
    acc_w[...] += w

    @pl.when(i == nb - 1)
    def _finalize():
        out_ref[0] = jnp.sum(acc_sse[...])
        out_ref[1] = jnp.sum(acc_w[...])


def masked_sse_sums(x, y, mask):
    """Returns (sum((1-mask)*(x-y)^2), sum(1-mask)) computed in one Pallas kernel."""
    total = int(np.prod(x.shape))
    rem = total % _LANES

    def to2d(a):
        a = a.reshape(-1).astype(jnp.float32)
        if rem:
            # Only hit when numel is not a multiple of 128 (never in this script);
            # the padded region is ignored via the in-kernel validity mask.
            a = jnp.pad(a, (0, _LANES - rem))
        return a.reshape(-1, _LANES)

    xf, yf, mf = to2d(x), to2d(y), to2d(mask)
    rows = xf.shape[0]
    block_rows = min(_MAX_BLOCK_ROWS, _round_up(rows, 8))
    nblocks = pl.cdiv(rows, block_rows)
    exact = (nblocks * block_rows == rows) and (rem == 0)

    spec = pl.BlockSpec((block_rows, _LANES), lambda i: (i, 0))
    kernel = functools.partial(_masked_sse_kernel, total=total,
                               block_rows=block_rows, exact=exact)
    out = pl.pallas_call(
        kernel,
        out_shape=jax.ShapeDtypeStruct((2,), jnp.float32),
        grid=(nblocks,),
        in_specs=[spec, spec, spec],
        out_specs=pl.BlockSpec(memory_space=pltpu.MemorySpace.SMEM),
        scratch_shapes=[pltpu.VMEM((block_rows, _LANES), jnp.float32),
                        pltpu.VMEM((block_rows, _LANES), jnp.float32)],
        compiler_params=pltpu.CompilerParams(
            dimension_semantics=("arbitrary",)),
    )(xf, yf, mf)
    return out[0], out[1]


# ----------------------------------------------------------------------------
# Kernel 2: fused registration SSE.
#   out[0] = sum((warp - tgt)^2)
#   out[1] = sum((flip(warp,1) - tgt)^2)  ==  sum((warp - flip(tgt,1))^2)
# One grid axis over channels; the channel flip is expressed through the
# index_map of the second tgt operand (no jnp.flip copy, no ones mask).
# ----------------------------------------------------------------------------
def _reg_sse_kernel(w_ref, t_ref, tf_ref, out_ref, acc_a, acc_b):
    j = pl.program_id(0)

    @pl.when(j == 0)
    def _init():
        acc_a[...] = jnp.zeros_like(acc_a)
        acc_b[...] = jnp.zeros_like(acc_b)

    w = w_ref[...]
    d1 = w - t_ref[...]
    d2 = w - tf_ref[...]
    acc_a[...] += d1 * d1
    acc_b[...] += d2 * d2

    @pl.when(j == pl.num_programs(0) - 1)
    def _finalize():
        out_ref[0] = jnp.sum(acc_a[...])
        out_ref[1] = jnp.sum(acc_b[...])


def registration_sse_sums(warp, tgt):
    n, c, h, w = warp.shape
    wf = warp.astype(jnp.float32)
    tf = tgt.astype(jnp.float32)
    blk = (n, 1, h, w)                      # last two dims == full array dims
    spec_id = pl.BlockSpec(blk, lambda j: (0, j, 0, 0))
    spec_flip = pl.BlockSpec(blk, lambda j: (0, c - 1 - j, 0, 0))
    out = pl.pallas_call(
        _reg_sse_kernel,
        out_shape=jax.ShapeDtypeStruct((2,), jnp.float32),
        grid=(c,),
        in_specs=[spec_id, spec_id, spec_flip],
        out_specs=pl.BlockSpec(memory_space=pltpu.MemorySpace.SMEM),
        scratch_shapes=[pltpu.VMEM(blk, jnp.float32),
                        pltpu.VMEM(blk, jnp.float32)],
        compiler_params=pltpu.CompilerParams(
            dimension_semantics=("arbitrary",)),
    )(wf, tf, tf)
    count = float(n * c * h * w)
    return out[0], out[1], count


# ----------------------------------------------------------------------------
# Kernel 3: flow gradient-loss partial sums (l2 penalty), tiled over the N*C
# planes so per-step VMEM stays bounded on v7x (no whole-tensor residency).
#   out[0] = sum(dy^2) over (B, H-1, W),  out[1] = sum(dx^2) over (B, H, W-1)
# ----------------------------------------------------------------------------
def _grad_sums_kernel(f_ref, out_ref):
    b = pl.program_id(0)

    @pl.when(b == 0)
    def _init():
        out_ref[0] = 0.0
        out_ref[1] = 0.0

    f = f_ref[0]                   # (H, W) plane
    dy = f[1:, :] - f[:-1, :]
    dx = f[:, 1:] - f[:, :-1]
    out_ref[0] += jnp.sum(dy * dy)
    out_ref[1] += jnp.sum(dx * dx)


def gradient_loss_pallas(flow):
    n, c, h, w = flow.shape
    b = n * c
    f = flow.reshape(b, h, w).astype(jnp.float32)
    sums = pl.pallas_call(
        _grad_sums_kernel,
        out_shape=jax.ShapeDtypeStruct((2,), jnp.float32),
        grid=(b,),
        in_specs=[pl.BlockSpec((1, h, w), lambda i: (i, 0, 0))],
        out_specs=pl.BlockSpec(memory_space=pltpu.MemorySpace.SMEM),
        compiler_params=pltpu.CompilerParams(
            dimension_semantics=("arbitrary",)),
    )(f)
    n_dy = b * (h - 1) * w
    n_dx = b * h * (w - 1)
    return (sums[1] / n_dx + sums[0] / n_dy) / 2.0


# ----------------------------------------------------------------------------
# TotalLoss equivalent.
# ----------------------------------------------------------------------------
class TotalLossPallas:
    def __init__(self, config):
        self.w_single = config['weight_single']
        self.w_reg = config['weight_registration']
        self.w_grad = config['weight_grad']
        self.w_multi = config['weight_multi']

    def __call__(self, outputs, noisy_img, idx_tgt):
        mask1, denoise1_img, flow, tgt, warp, mask2, denoise2_img = outputs

        if denoise1_img is not None:
            sse1, msum1 = masked_sse_sums(noisy_img, denoise1_img, mask1)
            loss_denoise1 = sse1 / msum1
        else:
            loss_denoise1 = 0.0

        if warp is not None:
            s1, s2, cnt = registration_sse_sums(warp, tgt)
            loss_registration = (s1 / cnt + s2 / cnt) / 2.0
            loss_gradient = gradient_loss_pallas(flow)
        else:
            loss_registration = loss_gradient = 0.0

        if denoise2_img is not None:
            # noisy_img[[idx_tgt]]: idx_tgt must be a static Python int (as in the ref).
            noisy_tgt = noisy_img[idx_tgt:idx_tgt + 1]
            sse2, msum2 = masked_sse_sums(noisy_tgt, denoise2_img, mask2)
            loss_denoise2 = sse2 / msum2
        else:
            loss_denoise2 = 0.0

        return (self.w_single * loss_denoise1
                + self.w_reg * loss_registration
                + self.w_grad * loss_gradient
                + self.w_multi * loss_denoise2)


# ----------------------------------------------------------------------------
# Pure-JAX reference (mirrors the PyTorch code exactly) for validation.
# ----------------------------------------------------------------------------
def _ref_masked_mse(x, y, mask=None):
    err2 = (x - y) ** 2
    if mask is not None:
        return jnp.sum(mask * err2) / jnp.sum(mask)
    return jnp.mean(err2)


def _ref_gradient_loss(s):
    dy = jnp.abs(s[:, :, 1:, :] - s[:, :, :-1, :]) ** 2
    dx = jnp.abs(s[:, :, :, 1:] - s[:, :, :, :-1]) ** 2
    return (jnp.mean(dx) + jnp.mean(dy)) / 2.0


def _ref_total_loss(config, outputs, noisy_img, idx_tgt):
    mask1, denoise1_img, flow, tgt, warp, mask2, denoise2_img = outputs
    l1 = _ref_masked_mse(noisy_img, denoise1_img, 1.0 - mask1)
    lr = (_ref_masked_mse(warp, tgt)
          + _ref_masked_mse(jnp.flip(warp, axis=1), tgt)) / 2.0
    lg = _ref_gradient_loss(flow)
    l2 = _ref_masked_mse(noisy_img[idx_tgt:idx_tgt + 1], denoise2_img,
                         1.0 - mask2)
    return (config['weight_single'] * l1
            + config['weight_registration'] * lr
            + config['weight_grad'] * lg
            + config['weight_multi'] * l2)


if __name__ == "__main__":
    key = jax.random.PRNGKey(0)
    N, C, H, W = 2, 4, 16, 16
    FLOW_C = 2
    idx_tgt = 1

    ks = jax.random.split(key, 8)
    noisy_img = jax.random.normal(ks[0], (N, C, H, W), jnp.float32)
    mask1 = jax.random.bernoulli(ks[1], 0.5, (N, C, H, W)).astype(jnp.float32)
    denoise1_img = jax.random.normal(ks[2], (N, C, H, W), jnp.float32)
    flow = 0.1 * jax.random.normal(ks[3], (N, FLOW_C, H, W), jnp.float32)
    tgt = jax.random.normal(ks[4], (N, C, H, W), jnp.float32)
    warp = jax.random.normal(ks[5], (N, C, H, W), jnp.float32)
    mask2 = jax.random.bernoulli(ks[6], 0.5, (1, C, H, W)).astype(jnp.float32)
    denoise2_img = jax.random.normal(ks[7], (1, C, H, W), jnp.float32)

    outputs = (mask1, denoise1_img, flow, tgt, warp, mask2, denoise2_img)

    config = {'weight_single': 1.0, 'weight_registration': 0.5,
              'weight_grad': 0.02, 'weight_multi': 1.0}

    loss_fn = TotalLossPallas(config)
    # Single jit over the whole loss so the four pallas_calls dispatch back-to-back.
    loss_jit = jax.jit(lambda outs, noisy: loss_fn(outs, noisy, idx_tgt))
    loss = jax.block_until_ready(loss_jit(outputs, noisy_img))

    ref = jax.block_until_ready(_ref_total_loss(config, outputs, noisy_img,
                                                idx_tgt))
    np.testing.assert_allclose(np.asarray(loss), np.asarray(ref),
                               rtol=1e-4, atol=1e-5)
    print("KERNEL_OK")
</pallas_src>

<mosaic_0001>
module attributes {stable_mosaic.version = 11 : i64} {
  func.func @_masked_sse_kernel(%arg0: i32, %arg1: memref<16x128xf32, #tpu.memory_space<vmem>>, %arg2: memref<16x128xf32, #tpu.memory_space<vmem>>, %arg3: memref<16x128xf32, #tpu.memory_space<vmem>>, %arg4: memref<2xf32, #tpu.memory_space<smem>>, %arg5: memref<16x128xf32, #tpu.memory_space<vmem>>, %arg6: memref<16x128xf32, #tpu.memory_space<vmem>>) attributes {dimension_semantics = [#tpu.dimension_semantics<arbitrary>], iteration_bounds = array<i64: 1>, scalar_prefetch = 0 : i64, scratch_operands = 2 : i64, tpu.core_type = #tpu.core_type<tc>, window_params = [{transform_indices = @transform_0, window_bounds = array<i64: 16, 128>}, {transform_indices = @transform_1, window_bounds = array<i64: 16, 128>}, {transform_indices = @transform_2, window_bounds = array<i64: 16, 128>}, {transform_indices = @transform_3, window_bounds = array<i64: 2>}]} {
    %c0_i32 = arith.constant 0 : i32
    %0 = arith.cmpi eq, %arg0, %c0_i32 : i32
    %1 = arith.extui %0 : i1 to i32
    %c0_i32_0 = arith.constant 0 : i32
    %2 = arith.cmpi ne, %1, %c0_i32_0 : i32
    scf.if %2 {
      %cst_16 = arith.constant 0.000000e+00 : f32
      %20 = vector.broadcast %cst_16 : f32 to vector<16x128xf32>
      %c0_17 = arith.constant 0 : index
      %c0_18 = arith.constant 0 : index
      %21 = vector.load %arg5[%c0_17, %c0_18] : memref<16x128xf32, #tpu.memory_space<vmem>>, vector<16x128xf32>
      tpu.vector_store %arg5[%c0_17, %c0_18], %20 {strides = array<i32>} : memref<16x128xf32, #tpu.memory_space<vmem>>, vector<16x128xf32>,
      %cst_19 = arith.constant 0.000000e+00 : f32
      %22 = vector.broadcast %cst_19 : f32 to vector<16x128xf32>
      %c0_20 = arith.constant 0 : index
      %c0_21 = arith.constant 0 : index
      %23 = vector.load %arg6[%c0_20, %c0_21] : memref<16x128xf32, #tpu.memory_space<vmem>>, vector<16x128xf32>
      tpu.vector_store %arg6[%c0_20, %c0_21], %22 {strides = array<i32>} : memref<16x128xf32, #tpu.memory_space<vmem>>, vector<16x128xf32>,
    } else {
    }
    %c0 = arith.constant 0 : index
    %c0_1 = arith.constant 0 : index
    %3 = vector.load %arg1[%c0, %c0_1] : memref<16x128xf32, #tpu.memory_space<vmem>>, vector<16x128xf32>
    %c0_2 = arith.constant 0 : index
    %c0_3 = arith.constant 0 : index
    %4 = vector.load %arg2[%c0_2, %c0_3] : memref<16x128xf32, #tpu.memory_space<vmem>>, vector<16x128xf32>
    %5 = arith.subf %3, %4 : vector<16x128xf32>
    %c0_4 = arith.constant 0 : index
    %c0_5 = arith.constant 0 : index
    %6 = vector.load %arg3[%c0_4, %c0_5] : memref<16x128xf32, #tpu.memory_space<vmem>>, vector<16x128xf32>
    %cst = arith.constant 1.000000e+00 : f32
    %7 = vector.broadcast %cst : f32 to vector<16x128xf32>
    %8 = arith.subf %7, %6 : vector<16x128xf32>
    %9 = arith.mulf %8, %5 : vector<16x128xf32>
    %10 = arith.mulf %9, %5 : vector<16x128xf32>
    %c0_6 = arith.constant 0 : index
    %c0_7 = arith.constant 0 : index
    %11 = vector.load %arg5[%c0_6, %c0_7] : memref<16x128xf32, #tpu.memory_space<vmem>>, vector<16x128xf32>
    %12 = arith.addf %11, %10 : vector<16x128xf32>
    %c0_8 = arith.constant 0 : index
    %c0_9 = arith.constant 0 : index
    %13 = vector.load %arg5[%c0_8, %c0_9] : memref<16x128xf32, #tpu.memory_space<vmem>>, vector<16x128xf32>
    tpu.vector_store %arg5[%c0_8, %c0_9], %12 {strides = array<i32>} : memref<16x128xf32, #tpu.memory_space<vmem>>, vector<16x128xf32>,
    %c0_10 = arith.constant 0 : index
    %c0_11 = arith.constant 0 : index
    %14 = vector.load %arg6[%c0_10, %c0_11] : memref<16x128xf32, #tpu.memory_space<vmem>>, vector<16x128xf32>
    %15 = arith.addf %14, %8 : vector<16x128xf32>
    %c0_12 = arith.constant 0 : index
    %c0_13 = arith.constant 0 : index
    %16 = vector.load %arg6[%c0_12, %c0_13] : memref<16x128xf32, #tpu.memory_space<vmem>>, vector<16x128xf32>
    tpu.vector_store %arg6[%c0_12, %c0_13], %15 {strides = array<i32>} : memref<16x128xf32, #tpu.memory_space<vmem>>, vector<16x128xf32>,
    %c0_i32_14 = arith.constant 0 : i32
    %17 = arith.cmpi eq, %arg0, %c0_i32_14 : i32
    %18 = arith.extui %17 : i1 to i32
    %c0_i32_15 = arith.constant 0 : i32
    %19 = arith.cmpi ne, %18, %c0_i32_15 : i32
    scf.if %19 {
      %c0_16 = arith.constant 0 : index
      %c0_17 = arith.constant 0 : index
      %20 = vector.load %arg5[%c0_16, %c0_17] : memref<16x128xf32, #tpu.memory_space<vmem>>, vector<16x128xf32>
      %21 = vector.shape_cast %20 : vector<16x128xf32> to vector<1x16x128xf32>
      %cst_18 = arith.constant dense<0.000000e+00> : vector<1xf32>
      %22 = vector.multi_reduction <add>, %21, %cst_18 [1, 2] : vector<1x16x128xf32> to vector<1xf32>
      %23 = vector.shape_cast %22 : vector<1xf32> to vector<1x1x1xf32>
      %24 = vector.extract %23[0, 0, 0] : f32 from vector<1x1x1xf32>
      %c0_19 = arith.constant 0 : index
      %25 = memref.load %arg4[%c0_19] : memref<2xf32, #tpu.memory_space<smem>>
      memref.store %24, %arg4[%c0_19] : memref<2xf32, #tpu.memory_space<smem>>
      %c0_20 = arith.constant 0 : index
      %c0_21 = arith.constant 0 : index
      %26 = vector.load %arg6[%c0_20, %c0_21] : memref<16x128xf32, #tpu.memory_space<vmem>>, vector<16x128xf32>
      %27 = vector.shape_cast %26 : vector<16x128xf32> to vector<1x16x128xf32>
      %cst_22 = arith.constant dense<0.000000e+00> : vector<1xf32>
      %28 = vector.multi_reduction <add>, %27, %cst_22 [1, 2] : vector<1x16x128xf32> to vector<1xf32>
      %29 = vector.shape_cast %28 : vector<1xf32> to vector<1x1x1xf32>
      %30 = vector.extract %29[0, 0, 0] : f32 from vector<1x1x1xf32>
      %c1 = arith.constant 1 : index
      %31 = memref.load %arg4[%c1] : memref<2xf32, #tpu.memory_space<smem>>
      memref.store %30, %arg4[%c1] : memref<2xf32, #tpu.memory_space<smem>>
    } else {
    }
    return
  }
  func.func @transform_0(%arg0: i32) -> (i32, i32) {
    %c0_i32 = arith.constant 0 : i32
    %c0_i32_0 = arith.constant 0 : i32
    return %arg0, %c0_i32 : i32, i32
  }
  func.func @transform_1(%arg0: i32) -> (i32, i32) {
    %c0_i32 = arith.constant 0 : i32
    %c0_i32_0 = arith.constant 0 : i32
    return %arg0, %c0_i32 : i32, i32
  }
  func.func @transform_2(%arg0: i32) -> (i32, i32) {
    %c0_i32 = arith.constant 0 : i32
    %c0_i32_0 = arith.constant 0 : i32
    return %arg0, %c0_i32 : i32, i32
  }
  func.func @transform_3(%arg0: i32) -> i32 {
    %c0_i32 = arith.constant 0 : i32
    %c0_i32_0 = arith.constant 0 : i32
    return %c0_i32 : i32
  }
}

module attributes {stable_mosaic.version = 11 : i64} {
  func.func @_grad_sums_kernel(%arg0: i32, %arg1: memref<1x16x16xf32, #tpu.memory_space<vmem>>, %arg2: memref<2xf32, #tpu.memory_space<smem>>) attributes {dimension_semantics = [#tpu.dimension_semantics<arbitrary>], iteration_bounds = array<i64: 4>, scalar_prefetch = 0 : i64, scratch_operands = 0 : i64, tpu.core_type = #tpu.core_type<tc>, window_params = [{transform_indices = @transform_0, window_bounds = array<i64: 1, 16, 16>}, {transform_indices = @transform_1, window_bounds = array<i64: 2>}]} {
    %c0_i32 = arith.constant 0 : i32
    %0 = arith.cmpi eq, %arg0, %c0_i32 : i32
    %1 = arith.extui %0 : i1 to i32
    %c0_i32_0 = arith.constant 0 : i32
    %2 = arith.cmpi ne, %1, %c0_i32_0 : i32
    scf.if %2 {
      %cst_7 = arith.constant 0.000000e+00 : f32
      %c0_8 = arith.constant 0 : index
      %27 = memref.load %arg2[%c0_8] : memref<2xf32, #tpu.memory_space<smem>>
      memref.store %cst_7, %arg2[%c0_8] : memref<2xf32, #tpu.memory_space<smem>>
      %cst_9 = arith.constant 0.000000e+00 : f32
      %c1_10 = arith.constant 1 : index
      %28 = memref.load %arg2[%c1_10] : memref<2xf32, #tpu.memory_space<smem>>
      memref.store %cst_9, %arg2[%c1_10] : memref<2xf32, #tpu.memory_space<smem>>
    } else {
    }
    %c0 = arith.constant 0 : index
    %c0_1 = arith.constant 0 : index
    %c0_2 = arith.constant 0 : index
    %3 = vector.load %arg1[%c0, %c0_1, %c0_2] : memref<1x16x16xf32, #tpu.memory_space<vmem>>, vector<1x16x16xf32>
    %4 = vector.shape_cast %3 : vector<1x16x16xf32> to vector<16x16xf32>
    %5 = vector.extract_strided_slice %4 {offsets = [1, 0], sizes = [15, 16], strides = [1, 1]} : vector<16x16xf32> to vector<15x16xf32>
    %6 = vector.extract_strided_slice %4 {offsets = [0, 0], sizes = [15, 16], strides = [1, 1]} : vector<16x16xf32> to vector<15x16xf32>
    %7 = arith.subf %5, %6 : vector<15x16xf32>
    %8 = vector.extract_strided_slice %4 {offsets = [0, 1], sizes = [16, 15], strides = [1, 1]} : vector<16x16xf32> to vector<16x15xf32>
    %9 = vector.extract_strided_slice %4 {offsets = [0, 0], sizes = [16, 15], strides = [1, 1]} : vector<16x16xf32> to vector<16x15xf32>
    %10 = arith.subf %8, %9 : vector<16x15xf32>
    %c0_3 = arith.constant 0 : index
    %11 = memref.load %arg2[%c0_3] : memref<2xf32, #tpu.memory_space<smem>>
    %12 = arith.mulf %7, %7 : vector<15x16xf32>
    %13 = vector.shape_cast %12 : vector<15x16xf32> to vector<1x15x16xf32>
    %cst = arith.constant dense<0.000000e+00> : vector<1xf32>
    %14 = vector.multi_reduction <add>, %13, %cst [1, 2] : vector<1x15x16xf32> to vector<1xf32>
    %15 = vector.shape_cast %14 : vector<1xf32> to vector<1x1x1xf32>
    %16 = vector.extract %15[0, 0, 0] : f32 from vector<1x1x1xf32>
    %17 = arith.addf %11, %16 : f32
    %c0_4 = arith.constant 0 : index
    %18 = memref.load %arg2[%c0_4] : memref<2xf32, #tpu.memory_space<smem>>
    memref.store %17, %arg2[%c0_4] : memref<2xf32, #tpu.memory_space<smem>>
    %c1 = arith.constant 1 : index
    %19 = memref.load %arg2[%c1] : memref<2xf32, #tpu.memory_space<smem>>
    %20 = arith.mulf %10, %10 : vector<16x15xf32>
    %21 = vector.shape_cast %20 : vector<16x15xf32> to vector<1x16x15xf32>
    %cst_5 = arith.constant dense<0.000000e+00> : vector<1xf32>
    %22 = vector.multi_reduction <add>, %21, %cst_5 [1, 2] : vector<1x16x15xf32> to vector<1xf32>
    %23 = vector.shape_cast %22 : vector<1xf32> to vector<1x1x1xf32>
    %24 = vector.extract %23[0, 0, 0] : f32 from vector<1x1x1xf32>
    %25 = arith.addf %19, %24 : f32
    %c1_6 = arith.constant 1 : index
    %26 = memref.load %arg2[%c1_6] : memref<2xf32, #tpu.memory_space<smem>>
    memref.store %25, %arg2[%c1_6] : memref<2xf32, #tpu.memory_space<smem>>
    return
  }
  func.func @transform_0(%arg0: i32) -> (i32, i32, i32) {
    %c0_i32 = arith.constant 0 : i32
    %c0_i32_0 = arith.constant 0 : i32
    %c0_i32_1 = arith.constant 0 : i32
    return %arg0, %c0_i32, %c0_i32_0 : i32, i32, i32
  }
  func.func @transform_1(%arg0: i32) -> i32 {
    %c0_i32 = arith.constant 0 : i32
    %c0_i32_0 = arith.constant 0 : i32
    return %c0_i32 : i32
  }
}

module attributes {stable_mosaic.version = 11 : i64} {
  func.func @_reg_sse_kernel(%arg0: i32, %arg1: memref<2x1x16x16xf32, #tpu.memory_space<vmem>>, %arg2: memref<2x1x16x16xf32, #tpu.memory_space<vmem>>, %arg3: memref<2x1x16x16xf32, #tpu.memory_space<vmem>>, %arg4: memref<2xf32, #tpu.memory_space<smem>>, %arg5: memref<2x1x16x16xf32, #tpu.memory_space<vmem>>, %arg6: memref<2x1x16x16xf32, #tpu.memory_space<vmem>>) attributes {dimension_semantics = [#tpu.dimension_semantics<arbitrary>], iteration_bounds = array<i64: 4>, scalar_prefetch = 0 : i64, scratch_operands = 2 : i64, tpu.core_type = #tpu.core_type<tc>, window_params = [{transform_indices = @transform_0, window_bounds = array<i64: 2, 1, 16, 16>}, {transform_indices = @transform_1, window_bounds = array<i64: 2, 1, 16, 16>}, {transform_indices = @transform_2, window_bounds = array<i64: 2, 1, 16, 16>}, {transform_indices = @transform_3, window_bounds = array<i64: 2>}]} {
    %c0_i32 = arith.constant 0 : i32
    %0 = arith.cmpi eq, %arg0, %c0_i32 : i32
    %1 = arith.extui %0 : i1 to i32
    %c0_i32_0 = arith.constant 0 : i32
    %2 = arith.cmpi ne, %1, %c0_i32_0 : i32
    scf.if %2 {
      %cst = arith.constant 0.000000e+00 : f32
      %19 = vector.broadcast %cst : f32 to vector<2x1x16x16xf32>
      %c0_29 = arith.constant 0 : index
      %c0_30 = arith.constant 0 : index
      %c0_31 = arith.constant 0 : index
      %c0_32 = arith.constant 0 : index
      %20 = vector.load %arg5[%c0_29, %c0_30, %c0_31, %c0_32] : memref<2x1x16x16xf32, #tpu.memory_space<vmem>>, vector<2x1x16x16xf32>
      tpu.vector_store %arg5[%c0_29, %c0_30, %c0_31, %c0_32], %19 {strides = array<i32>} : memref<2x1x16x16xf32, #tpu.memory_space<vmem>>, vector<2x1x16x16xf32>,
      %cst_33 = arith.constant 0.000000e+00 : f32
      %21 = vector.broadcast %cst_33 : f32 to vector<2x1x16x16xf32>
      %c0_34 = arith.constant 0 : index
      %c0_35 = arith.constant 0 : index
      %c0_36 = arith.constant 0 : index
      %c0_37 = arith.constant 0 : index
      %22 = vector.load %arg6[%c0_34, %c0_35, %c0_36, %c0_37] : memref<2x1x16x16xf32, #tpu.memory_space<vmem>>, vector<2x1x16x16xf32>
      tpu.vector_store %arg6[%c0_34, %c0_35, %c0_36, %c0_37], %21 {strides = array<i32>} : memref<2x1x16x16xf32, #tpu.memory_space<vmem>>, vector<2x1x16x16xf32>,
    } else {
    }
    %c0 = arith.constant 0 : index
    %c0_1 = arith.constant 0 : index
    %c0_2 = arith.constant 0 : index
    %c0_3 = arith.constant 0 : index
    %3 = vector.load %arg1[%c0, %c0_1, %c0_2, %c0_3] : memref<2x1x16x16xf32, #tpu.memory_space<vmem>>, vector<2x1x16x16xf32>
    %c0_4 = arith.constant 0 : index
    %c0_5 = arith.constant 0 : index
    %c0_6 = arith.constant 0 : index
    %c0_7 = arith.constant 0 : index
    %4 = vector.load %arg2[%c0_4, %c0_5, %c0_6, %c0_7] : memref<2x1x16x16xf32, #tpu.memory_space<vmem>>, vector<2x1x16x16xf32>
    %5 = arith.subf %3, %4 : vector<2x1x16x16xf32>
    %c0_8 = arith.constant 0 : index
    %c0_9 = arith.constant 0 : index
    %c0_10 = arith.constant 0 : index
    %c0_11 = arith.constant 0 : index
    %6 = vector.load %arg3[%c0_8, %c0_9, %c0_10, %c0_11] : memref<2x1x16x16xf32, #tpu.memory_space<vmem>>, vector<2x1x16x16xf32>
    %7 = arith.subf %3, %6 : vector<2x1x16x16xf32>
    %c0_12 = arith.constant 0 : index
    %c0_13 = arith.constant 0 : index
    %c0_14 = arith.constant 0 : index
    %c0_15 = arith.constant 0 : index
    %8 = vector.load %arg5[%c0_12, %c0_13, %c0_14, %c0_15] : memref<2x1x16x16xf32, #tpu.memory_space<vmem>>, vector<2x1x16x16xf32>
    %9 = arith.mulf %5, %5 : vector<2x1x16x16xf32>
    %10 = arith.addf %8, %9 : vector<2x1x16x16xf32>
    %c0_16 = arith.constant 0 : index
    %c0_17 = arith.constant 0 : index
    %c0_18 = arith.constant 0 : index
    %c0_19 = arith.constant 0 : index
    %11 = vector.load %arg5[%c0_16, %c0_17, %c0_18, %c0_19] : memref<2x1x16x16xf32, #tpu.memory_space<vmem>>, vector<2x1x16x16xf32>
    tpu.vector_store %arg5[%c0_16, %c0_17, %c0_18, %c0_19], %10 {strides = array<i32>} : memref<2x1x16x16xf32, #tpu.memory_space<vmem>>, vector<2x1x16x16xf32>,
    %c0_20 = arith.constant 0 : index
    %c0_21 = arith.constant 0 : index
    %c0_22 = arith.constant 0 : index
    %c0_23 = arith.constant 0 : index
    %12 = vector.load %arg6[%c0_20, %c0_21, %c0_22, %c0_23] : memref<2x1x16x16xf32, #tpu.memory_space<vmem>>, vector<2x1x16x16xf32>
    %13 = arith.mulf %7, %7 : vector<2x1x16x16xf32>
    %14 = arith.addf %12, %13 : vector<2x1x16x16xf32>
    %c0_24 = arith.constant 0 : index
    %c0_25 = arith.constant 0 : index
    %c0_26 = arith.constant 0 : index
    %c0_27 = arith.constant 0 : index
    %15 = vector.load %arg6[%c0_24, %c0_25, %c0_26, %c0_27] : memref<2x1x16x16xf32, #tpu.memory_space<vmem>>, vector<2x1x16x16xf32>
    tpu.vector_store %arg6[%c0_24, %c0_25, %c0_26, %c0_27], %14 {strides = array<i32>} : memref<2x1x16x16xf32, #tpu.memory_space<vmem>>, vector<2x1x16x16xf32>,
    %c3_i32 = arith.constant 3 : i32
    %16 = arith.cmpi eq, %arg0, %c3_i32 : i32
    %17 = arith.extui %16 : i1 to i32
    %c0_i32_28 = arith.constant 0 : i32
    %18 = arith.cmpi ne, %17, %c0_i32_28 : i32
    scf.if %18 {
      %c0_29 = arith.constant 0 : index
      %c0_30 = arith.constant 0 : index
      %c0_31 = arith.constant 0 : index
      %c0_32 = arith.constant 0 : index
      %19 = vector.load %arg5[%c0_29, %c0_30, %c0_31, %c0_32] : memref<2x1x16x16xf32, #tpu.memory_space<vmem>>, vector<2x1x16x16xf32>
      %20 = vector.shape_cast %19 : vector<2x1x16x16xf32> to vector<1x2x1x16x16xf32>
      %cst = arith.constant dense<0.000000e+00> : vector<1xf32>
      %21 = vector.multi_reduction <add>, %20, %cst [1, 2, 3, 4] : vector<1x2x1x16x16xf32> to vector<1xf32>
      %22 = vector.shape_cast %21 : vector<1xf32> to vector<1x1x1x1x1xf32>
      %23 = vector.extract %22[0, 0, 0, 0, 0] : f32 from vector<1x1x1x1x1xf32>
      %c0_33 = arith.constant 0 : index
      %24 = memref.load %arg4[%c0_33] : memref<2xf32, #tpu.memory_space<smem>>
      memref.store %23, %arg4[%c0_33] : memref<2xf32, #tpu.memory_space<smem>>
      %c0_34 = arith.constant 0 : index
      %c0_35 = arith.constant 0 : index
      %c0_36 = arith.constant 0 : index
      %c0_37 = arith.constant 0 : index
      %25 = vector.load %arg6[%c0_34, %c0_35, %c0_36, %c0_37] : memref<2x1x16x16xf32, #tpu.memory_space<vmem>>, vector<2x1x16x16xf32>
      %26 = vector.shape_cast %25 : vector<2x1x16x16xf32> to vector<1x2x1x16x16xf32>
      %cst_38 = arith.constant dense<0.000000e+00> : vector<1xf32>
      %27 = vector.multi_reduction <add>, %26, %cst_38 [1, 2, 3, 4] : vector<1x2x1x16x16xf32> to vector<1xf32>
      %28 = vector.shape_cast %27 : vector<1xf32> to vector<1x1x1x1x1xf32>
      %29 = vector.extract %28[0, 0, 0, 0, 0] : f32 from vector<1x1x1x1x1xf32>
      %c1 = arith.constant 1 : index
      %30 = memref.load %arg4[%c1] : memref<2xf32, #tpu.memory_space<smem>>
      memref.store %29, %arg4[%c1] : memref<2xf32, #tpu.memory_space<smem>>
    } else {
    }
    return
  }
  func.func @transform_0(%arg0: i32) -> (i32, i32, i32, i32) {
    %c0_i32 = arith.constant 0 : i32
    %c0_i32_0 = arith.constant 0 : i32
    %c0_i32_1 = arith.constant 0 : i32
    %c0_i32_2 = arith.constant 0 : i32
    return %c0_i32, %arg0, %c0_i32_0, %c0_i32_1 : i32, i32, i32, i32
  }
  func.func @transform_1(%arg0: i32) -> (i32, i32, i32, i32) {
    %c0_i32 = arith.constant 0 : i32
    %c0_i32_0 = arith.constant 0 : i32
    %c0_i32_1 = arith.constant 0 : i32
    %c0_i32_2 = arith.constant 0 : i32
    return %c0_i32, %arg0, %c0_i32_0, %c0_i32_1 : i32, i32, i32, i32
  }
  func.func @transform_2(%arg0: i32) -> (i32, i32, i32, i32) {
    %c3_i32 = arith.constant 3 : i32
    %0 = arith.subi %c3_i32, %arg0 : i32
    %c0_i32 = arith.constant 0 : i32
    %c0_i32_0 = arith.constant 0 : i32
    %c0_i32_1 = arith.constant 0 : i32
    %c0_i32_2 = arith.constant 0 : i32
    return %c0_i32, %0, %c0_i32_0, %c0_i32_1 : i32, i32, i32, i32
  }
  func.func @transform_3(%arg0: i32) -> i32 {
    %c0_i32 = arith.constant 0 : i32
    %c0_i32_0 = arith.constant 0 : i32
    return %c0_i32 : i32
  }
}

module attributes {stable_mosaic.version = 11 : i64} {
  func.func @_masked_sse_kernel(%arg0: i32, %arg1: memref<8x128xf32, #tpu.memory_space<vmem>>, %arg2: memref<8x128xf32, #tpu.memory_space<vmem>>, %arg3: memref<8x128xf32, #tpu.memory_space<vmem>>, %arg4: memref<2xf32, #tpu.memory_space<smem>>, %arg5: memref<8x128xf32, #tpu.memory_space<vmem>>, %arg6: memref<8x128xf32, #tpu.memory_space<vmem>>) attributes {dimension_semantics = [#tpu.dimension_semantics<arbitrary>], iteration_bounds = array<i64: 1>, scalar_prefetch = 0 : i64, scratch_operands = 2 : i64, tpu.core_type = #tpu.core_type<tc>, window_params = [{transform_indices = @transform_0, window_bounds = array<i64: 8, 128>}, {transform_indices = @transform_1, window_bounds = array<i64: 8, 128>}, {transform_indices = @transform_2, window_bounds = array<i64: 8, 128>}, {transform_indices = @transform_3, window_bounds = array<i64: 2>}]} {
    %c0_i32 = arith.constant 0 : i32
    %0 = arith.cmpi eq, %arg0, %c0_i32 : i32
    %1 = arith.extui %0 : i1 to i32
    %c0_i32_0 = arith.constant 0 : i32
    %2 = arith.cmpi ne, %1, %c0_i32_0 : i32
    scf.if %2 {
      %cst_16 = arith.constant 0.000000e+00 : f32
      %20 = vector.broadcast %cst_16 : f32 to vector<8x128xf32>
      %c0_17 = arith.constant 0 : index
      %c0_18 = arith.constant 0 : index
      %21 = vector.load %arg5[%c0_17, %c0_18] : memref<8x128xf32, #tpu.memory_space<vmem>>, vector<8x128xf32>
      tpu.vector_store %arg5[%c0_17, %c0_18], %20 {strides = array<i32>} : memref<8x128xf32, #tpu.memory_space<vmem>>, vector<8x128xf32>,
      %cst_19 = arith.constant 0.000000e+00 : f32
      %22 = vector.broadcast %cst_19 : f32 to vector<8x128xf32>
      %c0_20 = arith.constant 0 : index
      %c0_21 = arith.constant 0 : index
      %23 = vector.load %arg6[%c0_20, %c0_21] : memref<8x128xf32, #tpu.memory_space<vmem>>, vector<8x128xf32>
      tpu.vector_store %arg6[%c0_20, %c0_21], %22 {strides = array<i32>} : memref<8x128xf32, #tpu.memory_space<vmem>>, vector<8x128xf32>,
    } else {
    }
    %c0 = arith.constant 0 : index
    %c0_1 = arith.constant 0 : index
    %3 = vector.load %arg1[%c0, %c0_1] : memref<8x128xf32, #tpu.memory_space<vmem>>, vector<8x128xf32>
    %c0_2 = arith.constant 0 : index
    %c0_3 = arith.constant 0 : index
    %4 = vector.load %arg2[%c0_2, %c0_3] : memref<8x128xf32, #tpu.memory_space<vmem>>, vector<8x128xf32>
    %5 = arith.subf %3, %4 : vector<8x128xf32>
    %c0_4 = arith.constant 0 : index
    %c0_5 = arith.constant 0 : index
    %6 = vector.load %arg3[%c0_4, %c0_5] : memref<8x128xf32, #tpu.memory_space<vmem>>, vector<8x128xf32>
    %cst = arith.constant 1.000000e+00 : f32
    %7 = vector.broadcast %cst : f32 to vector<8x128xf32>
    %8 = arith.subf %7, %6 : vector<8x128xf32>
    %9 = arith.mulf %8, %5 : vector<8x128xf32>
    %10 = arith.mulf %9, %5 : vector<8x128xf32>
    %c0_6 = arith.constant 0 : index
    %c0_7 = arith.constant 0 : index
    %11 = vector.load %arg5[%c0_6, %c0_7] : memref<8x128xf32, #tpu.memory_space<vmem>>, vector<8x128xf32>
    %12 = arith.addf %11, %10 : vector<8x128xf32>
    %c0_8 = arith.constant 0 : index
    %c0_9 = arith.constant 0 : index
    %13 = vector.load %arg5[%c0_8, %c0_9] : memref<8x128xf32, #tpu.memory_space<vmem>>, vector<8x128xf32>
    tpu.vector_store %arg5[%c0_8, %c0_9], %12 {strides = array<i32>} : memref<8x128xf32, #tpu.memory_space<vmem>>, vector<8x128xf32>,
    %c0_10 = arith.constant 0 : index
    %c0_11 = arith.constant 0 : index
    %14 = vector.load %arg6[%c0_10, %c0_11] : memref<8x128xf32, #tpu.memory_space<vmem>>, vector<8x128xf32>
    %15 = arith.addf %14, %8 : vector<8x128xf32>
    %c0_12 = arith.constant 0 : index
    %c0_13 = arith.constant 0 : index
    %16 = vector.load %arg6[%c0_12, %c0_13] : memref<8x128xf32, #tpu.memory_space<vmem>>, vector<8x128xf32>
    tpu.vector_store %arg6[%c0_12, %c0_13], %15 {strides = array<i32>} : memref<8x128xf32, #tpu.memory_space<vmem>>, vector<8x128xf32>,
    %c0_i32_14 = arith.constant 0 : i32
    %17 = arith.cmpi eq, %arg0, %c0_i32_14 : i32
    %18 = arith.extui %17 : i1 to i32
    %c0_i32_15 = arith.constant 0 : i32
    %19 = arith.cmpi ne, %18, %c0_i32_15 : i32
    scf.if %19 {
      %c0_16 = arith.constant 0 : index
      %c0_17 = arith.constant 0 : index
      %20 = vector.load %arg5[%c0_16, %c0_17] : memref<8x128xf32, #tpu.memory_space<vmem>>, vector<8x128xf32>
      %21 = vector.shape_cast %20 : vector<8x128xf32> to vector<1x8x128xf32>
      %cst_18 = arith.constant dense<0.000000e+00> : vector<1xf32>
      %22 = vector.multi_reduction <add>, %21, %cst_18 [1, 2] : vector<1x8x128xf32> to vector<1xf32>
      %23 = vector.shape_cast %22 : vector<1xf32> to vector<1x1x1xf32>
      %24 = vector.extract %23[0, 0, 0] : f32 from vector<1x1x1xf32>
      %c0_19 = arith.constant 0 : index
      %25 = memref.load %arg4[%c0_19] : memref<2xf32, #tpu.memory_space<smem>>
      memref.store %24, %arg4[%c0_19] : memref<2xf32, #tpu.memory_space<smem>>
      %c0_20 = arith.constant 0 : index
      %c0_21 = arith.constant 0 : index
      %26 = vector.load %arg6[%c0_20, %c0_21] : memref<8x128xf32, #tpu.memory_space<vmem>>, vector<8x128xf32>
      %27 = vector.shape_cast %26 : vector<8x128xf32> to vector<1x8x128xf32>
      %cst_22 = arith.constant dense<0.000000e+00> : vector<1xf32>
      %28 = vector.multi_reduction <add>, %27, %cst_22 [1, 2] : vector<1x8x128xf32> to vector<1xf32>
      %29 = vector.shape_cast %28 : vector<1xf32> to vector<1x1x1xf32>
      %30 = vector.extract %29[0, 0, 0] : f32 from vector<1x1x1xf32>
      %c1 = arith.constant 1 : index
      %31 = memref.load %arg4[%c1] : memref<2xf32, #tpu.memory_space<smem>>
      memref.store %30, %arg4[%c1] : memref<2xf32, #tpu.memory_space<smem>>
    } else {
    }
    return
  }
  func.func @transform_0(%arg0: i32) -> (i32, i32) {
    %c0_i32 = arith.constant 0 : i32
    %c0_i32_0 = arith.constant 0 : i32
    return %arg0, %c0_i32 : i32, i32
  }
  func.func @transform_1(%arg0: i32) -> (i32, i32) {
    %c0_i32 = arith.constant 0 : i32
    %c0_i32_0 = arith.constant 0 : i32
    return %arg0, %c0_i32 : i32, i32
  }
  func.func @transform_2(%arg0: i32) -> (i32, i32) {
    %c0_i32 = arith.constant 0 : i32
    %c0_i32_0 = arith.constant 0 : i32
    return %arg0, %c0_i32 : i32, i32
  }
  func.func @transform_3(%arg0: i32) -> i32 {
    %c0_i32 = arith.constant 0 : i32
    %c0_i32_0 = arith.constant 0 : i32
    return %c0_i32 : i32
  }
}

</mosaic_0001>

<bundles_post_ra>
// kernel: _lambda_.4
= control target key start
LH: loop header
LB: loop body
LE: loop exit
PB: predicated region body
PF: predicated region fallthrough
CT: control target
= control target key end

     0   :  { %s156_s0 = inlined_call_operand.vmem [shape: f32[16,128], index: 0, kind: input, shape index: {}]   ;;  %s157_s1 = inlined_call_operand.vmem [shape: f32[16,128], index: 1, kind: input, shape index: {}]   ;;  %s158_s2 = inlined_call_operand.vmem [shape: f32[16,128], index: 2, kind: input, shape index: {}]   ;;  %s159_s3 = inlined_call_operand.vmem [shape: f32[2], index: 3, kind: output, shape index: {}]  }
   0x1   :  { %v23_v0 = vld [vmem:[%s156_s0] sm:$0xff]  ;;  %v24_v1 = vld [vmem:[%s156_s0 + $0x8] sm:$0xff] }
   0x2   :  { %v25_v2 = vld [vmem:[%s157_s1] sm:$0xff]  ;;  %v26_v3 = vld [vmem:[%s157_s1 + $0x8] sm:$0xff] }
   0x3   :  { %v27_v4 = vsub.f32 %v23_v0, %v25_v2  ;;  %v29_v5 = vld [vmem:[%s158_s2] sm:$0xff]  ;;  %v30_v6 = vld [vmem:[%s158_s2 + $0x8] sm:$0xff]  ;;  %v28_v7 = vsub.f32 %v24_v1, %v26_v3 }
   0x4   :  { %v31_v8 = vsub.f32 1.0, %v29_v5  ;;  %v32_v9 = vsub.f32 1.0, %v30_v6 }
   0x5   :  { %8 = vsyncpa [#allocation5], 0  ;;  %s86_s24 = sshll.u32 %s159_s3, 4  ;;  %s87_s24 = int_to_ptr.vmem [resolvable:$true] %s86_s24 }
   0x6   :  { %v33_v10 = vmul.f32 %v31_v8, %v27_v4  ;;  %v34_v11 = vmul.f32 %v32_v9, %v28_v7  ;;  %v68_v15 = vadd.f32 %v32_v9, %v31_v8  ;;  %s100_s26 = scalar_lea.vmem %s87_s24, 16  ;;  %p105_p1 = scmp.lt.s32.totalorder %s87_s24, %s87_s24 }
   0x7   :  { %p101_p0 = scmp.ne.s32.totalorder %s87_s24, %s100_s26  ;;  %p106_p2 = scmp.lt.s32.totalorder %s100_s26, %s100_s26 }
   0x8   :  { %v35_v12 = vmul.f32 %v33_v10, %v27_v4  ;;  %v36_v13 = vmul.f32 %v34_v11, %v28_v7 }
   0x9   :  { %p107_p3 = por %p106_p2, %p105_p1 }
   0xa   :  { %v54_v14 = vadd.f32 %v36_v13, %v35_v12 }
   0xb   :  { %p108_p4 = pnand %p107_p3, %p101_p0 }
   0xc   :  { %55 = vadd.xlane.f32.xlu0 %v54_v14 }
  0x10   :  { %69 = vadd.xlane.f32.xlu0 %v68_v15 }
  0x95   :  { %v56_v16 = vpop.xlane.xlu0 %55 }
  0x96   :  { %v57_v17 = vrot.slane %v56_v16, 4 }
  0x98   :  { %v58_v18 = vadd.f32 %v57_v17, %v56_v16 }
  0x99   :  { %v70_v19 = vpop.xlane.xlu0 %69 }
  0x9a   :  { %v59_v20 = vrot.slane %v58_v18, 2  ;;  %v71_v21 = vrot.slane %v70_v19, 4 }
  0x9c   :  { %v72_v22 = vadd.f32 %v71_v21, %v70_v19  ;;  %v60_v23 = vadd.f32 %v59_v20, %v58_v18 }
  0x9e   :  { %v73_v24 = vrot.slane %v72_v22, 2  ;;  %v61_v25 = vrot.slane %v60_v23, 1 }
  0xa0   :  { %v74_v26 = vadd.f32 %v73_v24, %v72_v22  ;;  %v62_v27 = vadd.f32 %v61_v25, %v60_v23 }
  0xa2   :  { %95 = vpush %v62_v27  ;;  %v75_v28 = vrot.slane %v74_v26, 1 }
  0xa4   :  { %v76_v29 = vadd.f32 %v75_v28, %v74_v26 }
  0xa6   :  { %97 = vpush %v76_v29 }
  0xd3   :  { %s96_s0 = spop %95 }
  0xd4   :  { %65 = sst [smem:[#allocation4]] %s96_s0 }
  0xd7   :  { %s98_s25 = spop %97 }
  0xd8   :  { %79 = sst [smem:[#allocation4 + $0x1]] %s98_s25 }
  0xd9   :  { %111 = shalt.err (!%p108_p4)
}
  0xda   :  { %s114_s27 = smov [#allocation4]  }
  0xdb   :  { %89 = dma.smem_to_vmem %s114_s27, 16, %s87_s24, [#allocation5]  }
  0xdc   :  { %112 = dma.done.wait [#allocation5], 16  }
  0xdd   :  { %113 = vsyncadd [#allocation5], 4294967280 }
  0xde   :  { %93 = sfence }
  0xdf   :  { %94 = vsyncpa [#allocation5], 1 }

// kernel: _lambda_.6
= control target key start
LH: loop header
LB: loop body
LE: loop exit
PB: predicated region body
PF: predicated region fallthrough
CT: control target
= control target key end

     0   :  { %6 = vsyncpa [#allocation3], 0  ;;  %s312_s6 = smov 0   ;;  %s343_s0 = inlined_call_operand.vmem [shape: f32[4,16,16], index: 0, kind: input, shape index: {}]   ;;  %s344_s1 = inlined_call_operand.vmem [shape: f32[2], index: 1, kind: output, shape index: {}]  }
   0x1 LB: > { %s318_s7 = sadd.s32 4294967295, %s296_s6   ;;  %p236_p0 = scmp.ge.s32.totalorder %s296_s6, 1  ;;  %s296_s6 = sphi %s312_s6, %s12_s6  }
   0x2   : > { %p83_p1 = scmp.lt.s32.totalorder %s296_s6, 5 }
   0x4   : > { %p84_p2 = pnand %p236_p0, %p83_p1 }
   0x5   : > { %p98_p3 = scmp.lt.s32.totalorder (!%p84_p2), %s318_s7, 3  ;;  %s298_s13 = smov (!%p84_p2), 1  }
   0x6   : > { %87 = sbr.rel (%p84_p2) target bundleno = 466 (0x1d2), region = 24  ;;  %s299_s14 = smov (!%p84_p2), 127  }
   0x7   : > { %p257_p4 = scmp.eq.s32.totalorder (!%p84_p2), %s318_s7, 0  ;;  %s300_s15 = smov (!%p84_p2), 0.0  }
   0x8   : > { %s193_s22 = sshll.u32 (!%p84_p2), %s344_s1, 4  ;;  %p258_p5 = scmp.eq.s32.totalorder (!%p84_p2), %s318_s7, 3  ;;  %s194_s22 = int_to_ptr.vmem [resolvable:$true] %s193_s22 }
   0x9   : > { %s272_s25 = scalar_lea.vmem (!%p84_p2), %s194_s22, 16  ;;  %p279_p9 = scmp.lt.s32.totalorder (!%p84_p2), %s194_s22, %s194_s22 }
   0xa   : > { %p273_p6 = scmp.ne.s32.totalorder (!%p84_p2), %s194_s22, %s272_s25  ;;  %p280_p10 = scmp.lt.s32.totalorder (!%p84_p2), %s272_s25, %s272_s25 }
   0xb   : > { %s99_s8 = scalar_select %p98_p3, %s318_s7, 3  ;;  %vm115_vm0 = vcmask 1040384   ;;  %vm136_vm1 = vcmask 1046528   ;;  %vm142_vm2 = vcmask 130048   ;;  %vm144_vm3 = vcmask 129024  }
   0xc   : > { %vm170_vm4 = vcmask 121856   ;;  %251 = sst [smem:[#allocation2]] (%p257_p4), %s300_s15  ;;  %p274_p7 = pnand %p273_p6, %p258_p5 }
   0xd   : > { %s245_s9 = sshll.u32 %s99_s8, 4  ;;  %252 = sst [smem:[#allocation2 + $0x1]] (%p257_p4), %s300_s15 }
   0xe   : > { %s102_s12 = scalar_lea.vmem %s343_s0, %s245_s9  ;;  %s131_s16 = sld [smem:[#allocation2]] }
   0xf   : > { %v111_v0 = vld [vmem:[%s102_s12] sm:$0xff]  ;;  %v112_v1 = vld [vmem:[%s102_s12 + $0x8] sm:$0xff]  ;;  %s240_s19 = sld [smem:[#allocation2 + $0x1]]  ;;  %p275_p8 = pneg %p274_p7 }
  0x10   : > { %123 = vrot.lane.b32.xlu0 %v111_v0, %s298_s13  ;;  %v116_v2 = vrot.slane %v111_v0, 7  ;;  %v117_v3 = vrot.slane %v112_v1, 7  ;;  %p281_p11 = por %p280_p10, %p279_p9 }
  0x12   : > { %v121_v4 = vsub.f32 %v111_v0, %v116_v2  ;;  %v118_v5 = vsel %vm115_vm0, %v116_v2, %v117_v3  ;;  %p282_p12 = pnand %p281_p11, %p275_p8 }
  0x13   : > { %v122_v7 = vsub.f32 %v112_v1, %v118_v5 }
  0x14   : > { %125 = vrot.lane.b32.xlu0 %v112_v1, %s298_s13  ;;  %v132_v6 = vmul.f32 %v121_v4, %v121_v4 }
  0x15   : > { %v133_v8 = vmul.f32 %v122_v7, %v122_v7 }
  0x16   : > { %v137_v9 = vrot.slane %v132_v6, 1 }
  0x17   : > { %v138_v10 = vrot.slane %v133_v8, 1 }
  0x19   : > { %v139_v11 = vsel %vm136_vm1, %v137_v9, %v138_v10  ;;  %v145_v13 = vsel %vm144_vm3, %v138_v10, 0.0 }
  0x1a   : > { %v143_v12 = vsel %vm142_vm2, %v139_v11, 0.0 }
  0x1b   : > { %v146_v14 = vadd.f32 %v145_v13, %v143_v12 }
  0x33   : > { %147 = vadd.xlane.f32.xlu0 %v146_v14 }
  0x82   : > { %v124_v15 = vpop.permute.xlu0 %123 }
  0x83   : > { %v129_v16 = vsub.f32 %v111_v0, %v124_v15 }
  0x85   : > { %v160_v17 = vmul.f32 %v129_v16, %v129_v16 }
  0x86   : > { %v126_v18 = vpop.permute.xlu0 %125 }
  0x87   : > { %v130_v19 = vsub.f32 %v112_v1, %v126_v18  ;;  %164 = vrot.lane.b32.xlu1 %v160_v17, %s299_s14 }
  0x89   : > { %v161_v20 = vmul.f32 %v130_v19, %v130_v19 }
  0x8b   : > { %166 = vrot.lane.b32.xlu1 %v161_v20, %s299_s14 }
  0xbc   : > { %v148_v26 = vpop.xlane.xlu0 %147 }
  0xbd   : > { %v149_v27 = vrot.slane %v148_v26, 4 }
  0xbf   : > { %v150_v28 = vadd.f32 %v149_v27, %v148_v26 }
  0xc1   : > { %v151_v29 = vrot.slane %v150_v28, 2 }
  0xc3   : > { %v152_v30 = vadd.f32 %v151_v29, %v150_v28 }
  0xc5   : > { %v153_v31 = vrot.slane %v152_v30, 1 }
  0xc7   : > { %v154_v32 = vadd.f32 %v153_v31, %v152_v30 }
  0xc9   : > { %246 = vpush %v154_v32 }
  0xf9   : > { %v165_v21 = vpop.permute.xlu1 %164 }
  0xfa   : > { %v171_v23 = vsel %vm170_vm4, %v165_v21, 0.0  ;;  %s247_s17 = spop %246 }
  0xfb   : > { %s156_s18 = sadd.f32 %s247_s17, %s131_s16 }
  0xfd   : > { %v167_v22 = vpop.permute.xlu1 %166  ;;  %158 = sst [smem:[#allocation2]] %s156_s18 }
  0xfe   : > { %v172_v24 = vsel %vm170_vm4, %v167_v22, 0.0 }
  0xff   : > { %v173_v25 = vadd.f32 %v172_v24, %v171_v23 }
 0x101   : > { %174 = vadd.xlane.f32.xlu1 %v173_v25 }
 0x18a   : > { %v175_v33 = vpop.xlane.xlu1 %174 }
 0x18b   : > { %v176_v34 = vrot.slane %v175_v33, 4 }
 0x18d   : > { %v177_v35 = vadd.f32 %v176_v34, %v175_v33 }
 0x18f   : > { %v178_v36 = vrot.slane %v177_v35, 2 }
 0x191   : > { %v179_v37 = vadd.f32 %v178_v36, %v177_v35 }
 0x193   : > { %v180_v38 = vrot.slane %v179_v37, 1 }
 0x195   : > { %v181_v39 = vadd.f32 %v180_v38, %v179_v37 }
 0x197   : > { %248 = vpush %v181_v39 }
 0x1c8   : > { %s249_s23 = spop %248 }
 0x1c9   : > { %s183_s24 = sadd.f32 %s249_s23, %s240_s19 }
 0x1cb   : > { %185 = sst [smem:[#allocation2 + $0x1]] %s183_s24 }
 0x1cc   : > { %285 = shalt.err (!%p282_p12)
}
 0x1cd   : > { %s301_s26 = smov [#allocation2]  }
 0x1ce   : > { %254 = dma.smem_to_vmem (%p258_p5), %s301_s26, 16, %s194_s22, [#allocation3]  }
 0x1cf   : > { %291 = dma.done.wait (%p258_p5), [#allocation3], 16  }
 0x1d0   : > { %293 = vsyncadd (%p258_p5), [#allocation3], 4294967280 }
 0x1d1   : > { %201 = sfence }
 0x1d2 PF: > { %s12_s6 = sadd.s32 1, %s296_s6  }
 0x1d3   : > { %p9_p13 = scmp.ge.s32.totalorder %s12_s6, 6  }
 0x1d5   :  { %11 = sbr.rel (!%p9_p13) target bundleno = 1 (0x1), region = 59 }
 0x1da   :  { %207 = vsyncpa [#allocation3], 1 }
 0x1db   :  { %209 = vsyncpa [#allocation3 + $0x1], 1 }

// kernel: _lambda_.5
= control target key start
LH: loop header
LB: loop body
LE: loop exit
PB: predicated region body
PF: predicated region fallthrough
CT: control target
= control target key end

     0   :  { %8 = vsyncpa [#allocation5], 0  ;;  %s926_s0 = inlined_call_operand.hbm [shape: f32[2,4,16,16], index: 0, kind: input, shape index: {}]   ;;  %s927_s1 = inlined_call_operand.vmem [shape: f32[2,4,16,16], index: 1, kind: input, shape index: {}, may-alias: {1,2}]   ;;  %s928_s2 = inlined_call_operand.vmem [shape: f32[2,4,16,16], index: 2, kind: input, shape index: {}, may-alias: {1,2}]   ;;  %s929_s3 = inlined_call_operand.vmem [shape: f32[2], index: 3, kind: output, shape index: {}]  }
   0x1   :  { %10 = vsyncpa [#allocation5 + $0x1], 0 }
   0x2   :  { %11 = vsyncpa [#allocation6], 0  ;;  %s750_s12 = smov 0   ;;  %s752_s13 = smov 0  }
   0x3   :  { %s754_s14 = smov 0   ;;  %s756_s15 = smov 0  }
   0x4   :  { %s758_s16 = smov 0   ;;  %s760_s17 = smov 0  }
   0x5 LB: > { %s779_s18 = sadd.s32 4294967295, %s720_s17   ;;  %s782_s19 = sadd.s32 1, %s720_s17   ;;  %s720_s17 = sphi %s760_s17, %s940_s17   ;;  %s716_s16 = sphi %s758_s16, %s939_s16   ;;  %s712_s15 = sphi %s756_s15, %s938_s15   ;;  %s708_s14 = sphi %s754_s14, %s937_s14   ;;  %s704_s13 = sphi %s752_s13, %s936_s13   ;;  %s700_s12 = sphi %s750_s12, %s935_s12  }
   0x6   : > { %s21_s20 = ssub.s32 %s720_s17, %s782_s19  ;;  %s24_s21 = sadd.s32 1, %s716_s16 }
   0x7   : > { %p22_p0 = scmp.eq.s32.totalorder %s21_s20, 0  ;;  %p31_p1 = scmp.ne.s32.totalorder %s716_s16, %s712_s15 }
   0x8   : > { %p32_p2 = scmp.eq.s32.totalorder %s720_s17, 0  ;;  %p37_p3 = scmp.ne.s32.totalorder %s712_s15, %s708_s14 }
   0x9   : > { %s792_s22 = scalar_select %p22_p0, %s716_s16, %s24_s21  }
   0xa   : > { %p796_p4 = por %p32_p2, %p31_p1  ;;  %p38_p5 = scmp.eq.s32.totalorder %s779_s18, 0 }
   0xb   : > { %s930_s24 = ssub.s32 3, %s720_s17  ;;  %s74_s25 = ssub.s32 3, %s782_s19 }
   0xc   : > { %p803_p6 = por %p38_p5, %p37_p3  ;;  %s75_s27 = ssub.s32 %s930_s24, %s74_s25 }
   0xd   : > { %p76_p7 = scmp.eq.s32.totalorder %s75_s27, 0  ;;  %s78_s28 = sadd.s32 1, %s704_s13 }
   0xe   : > { %p85_p8 = scmp.ne.s32.totalorder %s704_s13, %s700_s12  ;;  %p552_p10 = scmp.ge.s32.totalorder %s720_s17, 4 }
   0xf   : > { %s813_s29 = scalar_select %p76_p7, %s704_s13, %s78_s28  }
  0x10   : > { %p817_p9 = por %p85_p8, %p32_p2  ;;  %132 = sbr.rel (%p552_p10) target bundleno = 46 (0x2e), region = 16 }
  0x15   : > { %s136_s4 = sand.u32 1, %s716_s16   ;;  %s574_s5 = sshll.u32 %s720_s17, 8 }
  0x16   : > { %s553_s6 = sshll.u32 %s136_s4, 5  ;;  %s146_s9 = scalar_lea.hbm %s926_s0, %s574_s5 }
  0x17   : > { %s581_s10 = scalar_select %p796_p4, [#allocation0], [#allocation12] }
  0x18   : > { %s140_s11 = scalar_lea.vmem [#allocation4], %s553_s6  ;;  %s722_s21 = smov 1024  }
  0x19   : > { %s159_s14 = sshll.u32 %s140_s11, 4  ;;  %s151_s20 = sld [smem:[%s581_s10]]   ;;  %s160_s14 = int_to_ptr.vmem [resolvable:$true] %s159_s14 }
  0x1a   : > { %582 = sst [smem:[#allocation11]] (%p796_p4), %s722_s21  ;;  %s723_s25 = smov 256  }
  0x1b   : > { %583 = sst [smem:[#allocation11 + $0x1]] (%p796_p4), %s723_s25  ;;  %s724_s27 = smov 2  }
  0x1c   : > { %584 = sst [smem:[#allocation11 + $0x2]] (%p796_p4), %s724_s27  ;;  %s725_s28 = smov 128  }
  0x1d   : > { %585 = sst [smem:[#allocation11 + $0x3]] (%p796_p4), %s725_s28  ;;  %s726_s7 = smov 8  }
  0x1e   : > { %586 = sst [smem:[#allocation11 + $0x4]] (%p796_p4), %s725_s28  ;;  %s137_s10 = scalar_lea.sflag [#allocation5], %s136_s4 }
  0x1f   : > { %s556_s5 = sshll.u32 %s151_s20, 26  ;;  %587 = sst [smem:[#allocation11 + $0x5]] (%p796_p4), %s726_s7 }
  0x20   : > { %s557_s8 = sadd.s32 134217728, %s556_s5  ;;  %s727_s11 = smov 131072  }
  0x21   : > { %588 = dma.general (%p796_p4), %s146_s9, 512, %s160_s14, %s137_s10, %s727_s11, [#allocation11], %s557_s8, 0  }
  0x22   : > { %181 = sbr.rel (!%p796_p4) target bundleno = 39 (0x27), region = 24  ;;  %s575_s21 = sshll.u32 (%p796_p4), %s720_s17, 4 }
  0x23   : > { %s188_s24 = scalar_lea.vmem (%p796_p4), %s927_s1, %s575_s21  ;;  %s185_s20 = scalar_lea.vmem (%p796_p4), [#allocation7], %s553_s6 }
  0x24   : > { %v223_v0 = vld [vmem:[%s188_s24] sm:$0xff] (%p796_p4)  ;;  %v225_v1 = vld [vmem:[%s188_s24 + $0x8] sm:$0xff] (%p796_p4) }
  0x25   : > { %v227_v2 = vld [vmem:[%s188_s24 + $0x40] sm:$0xff] (%p796_p4)  ;;  %224 = vst [vmem:[%s185_s20] sm:$0xff] (%p796_p4), %v223_v0  ;;  %226 = vst [vmem:[%s185_s20 + $0x8] sm:$0xff] (%p796_p4), %v225_v1  ;;  %v229_v3 = vld [vmem:[%s188_s24 + $0x48] sm:$0xff] (%p796_p4) }
  0x26   : > { %228 = vst [vmem:[%s185_s20 + $0x10] sm:$0xff] (%p796_p4), %v227_v2  ;;  %230 = vst [vmem:[%s185_s20 + $0x18] sm:$0xff] (%p796_p4), %v229_v3 }
  0x27 PF: > { %236 = sbr.rel (!%p817_p9) target bundleno = 46 (0x2e), region = 62  ;;  %s238_s23 = sand.u32 (%p817_p9), 1, %s704_s13  }
  0x28   : > { %s934_s4 = ssub.s32 (%p817_p9), 3, %s720_s17  ;;  %s561_s14 = sshll.u32 (%p817_p9), %s238_s23, 5 }
  0x29   : > { %s576_s9 = sshll.u32 (%p817_p9), %s934_s4, 4  ;;  %s240_s6 = scalar_lea.vmem (%p817_p9), [#allocation8], %s561_s14 }
  0x2a   : > { %s244_s7 = scalar_lea.vmem (%p817_p9), %s928_s2, %s576_s9 }
  0x2b   : > { %v279_v4 = vld [vmem:[%s244_s7] sm:$0xff] (%p817_p9)  ;;  %v281_v5 = vld [vmem:[%s244_s7 + $0x8] sm:$0xff] (%p817_p9) }
  0x2c   : > { %v283_v6 = vld [vmem:[%s244_s7 + $0x40] sm:$0xff]  ;;  %280 = vst [vmem:[%s240_s6] sm:$0xff] %v279_v4  ;;  %282 = vst [vmem:[%s240_s6 + $0x8] sm:$0xff] %v281_v5  ;;  %v285_v7 = vld [vmem:[%s244_s7 + $0x48] sm:$0xff] }
  0x2d   : > { %284 = vst [vmem:[%s240_s6 + $0x10] sm:$0xff] %v283_v6  ;;  %286 = vst [vmem:[%s240_s6 + $0x18] sm:$0xff] %v285_v7 }
  0x2e PF: > { %p564_p11 = scmp.ge.s32.totalorder %s720_s17, 1  ;;  %p291_p12 = scmp.lt.s32.totalorder %s720_s17, 5 }
  0x30   : > { %p292_p13 = pnand %p564_p11, %p291_p12 }
  0x31   : > { %s297_s24 = sand.u32 (!%p292_p13), 1, %s712_s15  }
  0x32   : > { %295 = sbr.rel (%p292_p13) target bundleno = 313 (0x139), region = 100  ;;  %s565_s30 = sshll.u32 (!%p292_p13), %s297_s24, 5 }
  0x33   : > { %s298_s8 = scalar_lea.sflag (!%p292_p13), [#allocation5], %s297_s24  ;;  %s860_s10 = scalar_lea.vmem (!%p292_p13), [#allocation4], %s565_s30 }
  0x37   : > { %691 = dma.done.wait (%p803_p6), %s298_s8, 512  }
  0x38   : > { %693 = vsyncadd (%p803_p6), %s298_s8, 4294966784  ;;  %s314_s11 = sand.u32 1, %s700_s12   ;;  %s309_s25 = scalar_lea.vmem [#allocation7], %s565_s30 }
  0x39   : > { %s567_s21 = sshll.u32 %s314_s11, 5  ;;  %p568_p0 = scmp.ne.s32.totalorder %s779_s18, 0 }
  0x3a   : > { %s867_s27 = scalar_lea.vmem [#allocation8], %s567_s21 }
  0x3b   : > { %345 = sbr.rel (%p568_p0) target bundleno = 69 (0x45), region = 116 }
  0x40   : > { %vm346_vm0 = vcmask 130048   ;;  %v728_v8 = vmov 0.0  }
  0x41   : > { %347 = vst.msk [vmem:[#allocation2] sm:$0xff] %vm346_vm0, %v728_v8  ;;  %348 = vst.msk [vmem:[#allocation2 + $0x8] sm:$0xff] %vm346_vm0, %v728_v8 }
  0x42   : > { %349 = vst.msk [vmem:[#allocation2 + $0x10] sm:$0xff] %vm346_vm0, %v728_v8  ;;  %350 = vst.msk [vmem:[#allocation2 + $0x18] sm:$0xff] %vm346_vm0, %v728_v8 }
  0x43   : > { %351 = vst.msk [vmem:[#allocation3] sm:$0xff] %vm346_vm0, %v728_v8  ;;  %352 = vst.msk [vmem:[#allocation3 + $0x8] sm:$0xff] %vm346_vm0, %v728_v8 }
  0x44   : > { %353 = vst.msk [vmem:[#allocation3 + $0x10] sm:$0xff] %vm346_vm0, %v728_v8  ;;  %354 = vst.msk [vmem:[#allocation3 + $0x18] sm:$0xff] %vm346_vm0, %v728_v8 }
  0x45 PF: > { %v355_v9 = vld [vmem:[%s860_s10] sm:$0xff]  ;;  %v356_v12 = vld [vmem:[%s860_s10 + $0x8] sm:$0xff]  ;;  %v357_v16 = vld [vmem:[%s860_s10 + $0x10] sm:$0xff]  ;;  %vm387_vm1 = vcmask 130048   ;;  %p569_p1 = scmp.ne.s32.totalorder %s779_s18, 3 }
  0x46   : > { %v359_v10 = vld [vmem:[%s309_s25] sm:$0xff]  ;;  %v360_v13 = vld [vmem:[%s309_s25 + $0x8] sm:$0xff]  ;;  %v361_v17 = vld [vmem:[%s309_s25 + $0x10] sm:$0xff] }
  0x47   : > { %v363_v11 = vsub.f32 %v355_v9, %v359_v10  ;;  %v364_v15 = vsub.f32 %v356_v12, %v360_v13  ;;  %v365_v20 = vsub.f32 %v357_v16, %v361_v17  ;;  %v358_v21 = vld [vmem:[%s860_s10 + $0x18] sm:$0xff]  ;;  %v367_v26 = vld [vmem:[%s867_s27] sm:$0xff]  ;;  %v368_v27 = vld [vmem:[%s867_s27 + $0x8] sm:$0xff] }
  0x48   : > { %v375_v14 = vld [vmem:[#allocation2] sm:$0xff]  ;;  %v376_v19 = vld [vmem:[#allocation2 + $0x8] sm:$0xff]  ;;  %v362_v22 = vld [vmem:[%s309_s25 + $0x18] sm:$0xff]  ;;  %v371_v31 = vsub.f32 %v355_v9, %v367_v26  ;;  %v372_v32 = vsub.f32 %v356_v12, %v368_v27 }
  0x49   : > { %v379_v18 = vmul.f32 %v363_v11, %v363_v11  ;;  %v380_v23 = vmul.f32 %v364_v15, %v364_v15  ;;  %v377_v24 = vld [vmem:[#allocation2 + $0x10] sm:$0xff]  ;;  %v366_v25 = vsub.f32 %v358_v21, %v362_v22  ;;  %v381_v29 = vmul.f32 %v365_v20, %v365_v20  ;;  %v378_v30 = vld [vmem:[#allocation2 + $0x18] sm:$0xff] }
  0x4a   : > { %v369_v33 = vld [vmem:[%s867_s27 + $0x10] sm:$0xff]  ;;  %v392_v36 = vld [vmem:[#allocation3] sm:$0xff]  ;;  %v393_v37 = vld [vmem:[#allocation3 + $0x8] sm:$0xff]  ;;  %v396_v41 = vmul.f32 %v371_v31, %v371_v31  ;;  %v397_v42 = vmul.f32 %v372_v32, %v372_v32 }
  0x4b   : > { %v383_v28 = vadd.f32 %v379_v18, %v375_v14  ;;  %v384_v34 = vadd.f32 %v380_v23, %v376_v19  ;;  %v382_v35 = vmul.f32 %v366_v25, %v366_v25  ;;  %v373_v38 = vsub.f32 %v357_v16, %v369_v33  ;;  %v370_v39 = vld [vmem:[%s867_s27 + $0x18] sm:$0xff]  ;;  %v394_v43 = vld [vmem:[#allocation3 + $0x10] sm:$0xff] }
  0x4c   : > { %v385_v40 = vadd.f32 %v381_v29, %v377_v24  ;;  %v374_v44 = vsub.f32 %v358_v21, %v370_v39  ;;  %v395_v47 = vld [vmem:[#allocation3 + $0x18] sm:$0xff]  ;;  %v400_v48 = vadd.f32 %v396_v41, %v392_v36  ;;  %v401_v49 = vadd.f32 %v397_v42, %v393_v37 }
  0x4d   : > { %388 = vst.msk [vmem:[#allocation2] sm:$0xff] %vm387_vm1, %v383_v28  ;;  %389 = vst.msk [vmem:[#allocation2 + $0x8] sm:$0xff] %vm387_vm1, %v384_v34  ;;  %v386_v45 = vadd.f32 %v382_v35, %v378_v30  ;;  %v398_v46 = vmul.f32 %v373_v38, %v373_v38 }
  0x4e   : > { %390 = vst.msk [vmem:[#allocation2 + $0x10] sm:$0xff] %vm387_vm1, %v385_v40  ;;  %v399_v50 = vmul.f32 %v374_v44, %v374_v44  ;;  %404 = vst.msk [vmem:[#allocation3] sm:$0xff] %vm387_vm1, %v400_v48  ;;  %411 = sbr.rel (%p569_p1) target bundleno = 297 (0x129), region = 120 }
  0x4f   : > { %391 = vst.msk [vmem:[#allocation2 + $0x18] sm:$0xff] %vm387_vm1, %v386_v45  ;;  %v402_v51 = vadd.f32 %v398_v46, %v394_v43  ;;  %405 = vst.msk [vmem:[#allocation3 + $0x8] sm:$0xff] %vm387_vm1, %v401_v49 }
  0x50   : > { %v403_v52 = vadd.f32 %v399_v50, %v395_v47 }
  0x51   : > { %406 = vst.msk [vmem:[#allocation3 + $0x10] sm:$0xff] %vm387_vm1, %v402_v51 }
  0x52   : > { %407 = vst.msk [vmem:[#allocation3 + $0x18] sm:$0xff] %vm387_vm1, %v403_v52 }
  0x54   : > { %v412_v53 = vld [vmem:[#allocation2] sm:$0xff]  ;;  %v413_v54 = vld [vmem:[#allocation2 + $0x8] sm:$0xff] }
  0x55   : > { %v414_v55 = vld [vmem:[#allocation2 + $0x10] sm:$0xff]  ;;  %v416_v57 = vsel %vm387_vm1, %v412_v53, 0.0  ;;  %v417_v58 = vsel %vm387_vm1, %v413_v54, 0.0  ;;  %v434_v60 = vld [vmem:[#allocation3] sm:$0xff] }
  0x56   : > { %v415_v56 = vld [vmem:[#allocation2 + $0x18] sm:$0xff]  ;;  %v419_v59 = vsel %vm387_vm1, %v414_v55, 0.0  ;;  %v435_v61 = vld [vmem:[#allocation3 + $0x8] sm:$0xff]  ;;  %v418_v62 = vadd.f32 %v417_v58, %v416_v57  ;;  %v438_v1 = vsel %vm387_vm1, %v434_v60, 0.0 }
  0x57   : > { %v439_v2 = vsel %vm387_vm1, %v435_v61, 0.0  ;;  %v421_v3 = vsel %vm387_vm1, %v415_v56, 0.0 }
  0x58   : > { %v436_v63 = vld [vmem:[#allocation3 + $0x10] sm:$0xff]  ;;  %v440_v4 = vadd.f32 %v439_v2, %v438_v1  ;;  %v420_v6 = vadd.f32 %v419_v59, %v418_v62 }
  0x59   : > { %v437_v0 = vld [vmem:[#allocation3 + $0x18] sm:$0xff]  ;;  %v441_v5 = vsel %vm387_vm1, %v436_v63, 0.0 }
  0x5a   : > { %v442_v7 = vadd.f32 %v441_v5, %v440_v4  ;;  %v443_v8 = vsel %vm387_vm1, %v437_v0, 0.0  ;;  %v422_v9 = vadd.f32 %v421_v3, %v420_v6 }
  0x5c   : > { %423 = vadd.xlane.f32.xlu0 %v422_v9  ;;  %v444_v10 = vadd.f32 %v443_v8, %v442_v7 }
  0x60   : > { %445 = vadd.xlane.f32.xlu0 %v444_v10 }
  0xe5   : > { %v424_v11 = vpop.xlane.xlu0 %423 }
  0xe6   : > { %v425_v12 = vrot.slane %v424_v11, 4 }
  0xe8   : > { %v426_v13 = vadd.f32 %v425_v12, %v424_v11 }
  0xe9   : > { %v446_v14 = vpop.xlane.xlu0 %445 }
  0xea   : > { %v427_v15 = vrot.slane %v426_v13, 2  ;;  %v447_v16 = vrot.slane %v446_v14, 4 }
  0xec   : > { %v448_v17 = vadd.f32 %v447_v16, %v446_v14  ;;  %v428_v18 = vadd.f32 %v427_v15, %v426_v13 }
  0xee   : > { %v449_v19 = vrot.slane %v448_v17, 2  ;;  %v429_v20 = vrot.slane %v428_v18, 1 }
  0xf0   : > { %v450_v21 = vadd.f32 %v449_v19, %v448_v17  ;;  %v430_v22 = vadd.f32 %v429_v20, %v428_v18 }
  0xf2   : > { %577 = vpush %v430_v22  ;;  %v451_v23 = vrot.slane %v450_v21, 1 }
  0xf4   : > { %v452_v24 = vadd.f32 %v451_v23, %v450_v21 }
  0xf6   : > { %579 = vpush %v452_v24 }
 0x123   : > { %s578_s12 = spop %577 }
 0x124   : > { %433 = sst [smem:[#allocation9]] %s578_s12 }
 0x127   : > { %s580_s17 = spop %579 }
 0x128   : > { %455 = sst [smem:[#allocation9 + $0x1]] %s580_s17 }
 0x129 PF: > { %p594_p2 = scmp.eq.s32.totalorder %s779_s18, 3  ;;  %s463_s23 = sshll.u32 %s929_s3, 4  ;;  %s464_s23 = int_to_ptr.vmem [resolvable:$true] %s463_s23 }
 0x12a   : > { %s652_s4 = scalar_lea.vmem %s464_s23, 16  ;;  %p659_p6 = scmp.lt.s32.totalorder %s464_s23, %s464_s23 }
 0x12b   : > { %p653_p3 = scmp.ne.s32.totalorder %s464_s23, %s652_s4  ;;  %p660_p7 = scmp.lt.s32.totalorder %s652_s4, %s652_s4 }
 0x12d   : > { %p654_p4 = pnand %p653_p3, %p594_p2  ;;  %p661_p8 = por %p660_p7, %p659_p6 }
 0x12f   : > { %p655_p5 = pneg %p654_p4 }
 0x131   : > { %p662_p9 = pnand %p661_p8, %p655_p5 }
 0x133   : > { %665 = shalt.err (!%p662_p9)
}
 0x134   : > { %s729_s9 = smov [#allocation9]  }
 0x135   : > { %591 = dma.smem_to_vmem (%p594_p2), %s729_s9, 16, %s464_s23, [#allocation6]  }
 0x136   : > { %695 = dma.done.wait (%p594_p2), [#allocation6], 16  }
 0x137   : > { %697 = vsyncadd (%p594_p2), [#allocation6], 4294967280 }
 0x138   : > { %471 = sfence }
 0x139 PF: > { %p14_p10 = scmp.ge.s32.totalorder %s782_s19, 6   ;;  %s935_s12 = smov %s704_s13 }
 0x13a   : > { %s936_s13 = smov %s813_s29  ;;  %s937_s14 = smov %s712_s15 }
 0x13b   : > { %s938_s15 = smov %s716_s16  ;;  %s939_s16 = smov %s792_s22 }
 0x13c   : > { %s940_s17 = smov %s782_s19  ;;  %16 = sbr.rel (!%p14_p10) target bundleno = 5 (0x5), region = 176 }
 0x141   :  { %477 = vsyncpa [#allocation5], 1 }
 0x142   :  { %479 = vsyncpa [#allocation5 + $0x1], 1 }
 0x143   :  { %480 = vsyncpa [#allocation6], 1 }
 0x144   :  { %482 = vsyncpa [#allocation6 + $0x1], 1 }

// kernel: _lambda_.7
= control target key start
LH: loop header
LB: loop body
LE: loop exit
PB: predicated region body
PF: predicated region fallthrough
CT: control target
= control target key end

     0   :  { %s128_s0 = inlined_call_operand.vmem [shape: f32[8,128], index: 0, kind: input, shape index: {}]   ;;  %s129_s1 = inlined_call_operand.vmem [shape: f32[8,128], index: 1, kind: input, shape index: {}]   ;;  %s130_s2 = inlined_call_operand.vmem [shape: f32[8,128], index: 2, kind: input, shape index: {}]   ;;  %s131_s3 = inlined_call_operand.vmem [shape: f32[2], index: 3, kind: output, shape index: {}]  }
   0x1   :  { %v21_v0 = vld [vmem:[%s128_s0] sm:$0xff] }
   0x2   :  { %v22_v1 = vld [vmem:[%s129_s1] sm:$0xff] }
   0x3   :  { %v24_v2 = vld [vmem:[%s130_s2] sm:$0xff]  ;;  %v23_v3 = vsub.f32 %v21_v0, %v22_v1 }
   0x4   :  { %v25_v4 = vsub.f32 1.0, %v24_v2 }
   0x5   :  { %8 = vsyncpa [#allocation5], 0  ;;  %s67_s18 = sshll.u32 %s131_s3, 4  ;;  %s68_s18 = int_to_ptr.vmem [resolvable:$true] %s67_s18 }
   0x6   :  { %v26_v5 = vmul.f32 %v25_v4, %v23_v3  ;;  %s81_s20 = scalar_lea.vmem %s68_s18, 16  ;;  %p86_p1 = scmp.lt.s32.totalorder %s68_s18, %s68_s18 }
   0x7   :  { %p82_p0 = scmp.ne.s32.totalorder %s68_s18, %s81_s20  ;;  %p87_p2 = scmp.lt.s32.totalorder %s81_s20, %s81_s20 }
   0x8   :  { %v27_v6 = vmul.f32 %v26_v5, %v23_v3 }
   0x9   :  { %p88_p3 = por %p87_p2, %p86_p1 }
   0xa   :  { %38 = vadd.xlane.f32.xlu0 %v27_v6 }
   0xb   :  { %p89_p4 = pnand %p88_p3, %p82_p0 }
   0xe   :  { %50 = vadd.xlane.f32.xlu0 %v25_v4 }
  0x93   :  { %v39_v7 = vpop.xlane.xlu0 %38 }
  0x94   :  { %v40_v8 = vrot.slane %v39_v7, 4 }
  0x96   :  { %v41_v9 = vadd.f32 %v40_v8, %v39_v7 }
  0x97   :  { %v51_v10 = vpop.xlane.xlu0 %50 }
  0x98   :  { %v42_v11 = vrot.slane %v41_v9, 2  ;;  %v52_v12 = vrot.slane %v51_v10, 4 }
  0x9a   :  { %v53_v13 = vadd.f32 %v52_v12, %v51_v10  ;;  %v43_v14 = vadd.f32 %v42_v11, %v41_v9 }
  0x9c   :  { %v54_v15 = vrot.slane %v53_v13, 2  ;;  %v44_v16 = vrot.slane %v43_v14, 1 }
  0x9e   :  { %v55_v17 = vadd.f32 %v54_v15, %v53_v13  ;;  %v45_v18 = vadd.f32 %v44_v16, %v43_v14 }
  0xa0   :  { %76 = vpush %v45_v18  ;;  %v56_v19 = vrot.slane %v55_v17, 1 }
  0xa2   :  { %v57_v20 = vadd.f32 %v56_v19, %v55_v17 }
  0xa4   :  { %78 = vpush %v57_v20 }
  0xd1   :  { %s77_s0 = spop %76 }
  0xd2   :  { %48 = sst [smem:[#allocation4]] %s77_s0 }
  0xd5   :  { %s79_s19 = spop %78 }
  0xd6   :  { %60 = sst [smem:[#allocation4 + $0x1]] %s79_s19 }
  0xd7   :  { %92 = shalt.err (!%p89_p4)
}
  0xd8   :  { %s95_s21 = smov [#allocation4]  }
  0xd9   :  { %70 = dma.smem_to_vmem %s95_s21, 16, %s68_s18, [#allocation5]  }
  0xda   :  { %93 = dma.done.wait [#allocation5], 16  }
  0xdb   :  { %94 = vsyncadd [#allocation5], 4294967280 }
  0xdc   :  { %74 = sfence }
  0xdd   :  { %75 = vsyncpa [#allocation5], 1 }

</bundles_post_ra>
